<compile_context>
chip_gen: v5e
topology: v5e:2x2
jax: 0.10.0
libtpu: 0.0.40
codegen_flags: <defaults>
</compile_context>

<pallas_src>
import jax
import jax.numpy as jnp
from jax.experimental import pallas as pl
from jax.experimental.pallas import tpu as pltpu

# VPU unrolled chain whenever the output-channel count is small (MXU would use
# only C_out/256 of its output rows); cap C_in too so the unroll stays compact.
_VPU_MAX_C_OUT = 16
_VPU_MAX_C_IN = 256


def _outconv_vpu_kernel(w_ref, b_ref, x_ref, o_ref):
    """Unrolled scalar-broadcast FMA chain; weight/bias scalars live in SMEM.

    w_ref: SMEM (C_out, C_in)
    b_ref: SMEM (C_out,)
    x_ref: VMEM (1, C_in, TS, 128)  [sublane-dense]  or  (1, C_in, TL)  [fallback]
    o_ref: VMEM (1, C_out, TS, 128)                  or  (1, C_out, TL)
    """
    c_in = x_ref.shape[1]
    c_out = o_ref.shape[1]

    if len(x_ref.shape) == 4:
        # Sublane-dense: each channel slab is a dense (TS, 128) tile.
        xs = [x_ref[0, ci].astype(jnp.float32) for ci in range(c_in)]
        for co in range(c_out):
            acc = xs[0] * w_ref[co, 0] + b_ref[co]
            for ci in range(1, c_in):
                acc = acc + xs[ci] * w_ref[co, ci]
            o_ref[0, co] = acc.astype(o_ref.dtype)
    else:
        # Lane-dense fallback (HW not a multiple of 128): slab is (C_in, TL).
        x = x_ref[0].astype(jnp.float32)
        for co in range(c_out):
            acc = x[0:1, :] * w_ref[co, 0] + b_ref[co]
            for ci in range(1, c_in):
                acc = acc + x[ci:ci + 1, :] * w_ref[co, ci]
            o_ref[0, co:co + 1, :] = acc.astype(o_ref.dtype)


def _outconv_mxu_kernel(w_ref, b_ref, x_ref, o_ref):
    """MXU path for large channel counts (lane-dense layout).

    w_ref: VMEM (C_out, C_in); b_ref: VMEM (C_out, 1)  -- resident across grid.
    x_ref: VMEM (1, C_in, TL); o_ref: VMEM (1, C_out, TL)
    """
    x = x_ref[0].astype(jnp.float32)
    w = w_ref[...].astype(jnp.float32)
    out = jnp.dot(w, x, preferred_element_type=jnp.float32)
    o_ref[0] = (out + b_ref[...].astype(jnp.float32)).astype(o_ref.dtype)


def outconv_apply(x_nchw, weight, bias, *, target_block_bytes=1 << 20):
    """Forward of nn.Conv2d(in_channels, out_channels, kernel_size=1).

    x_nchw: (N, C_in, H, W); weight: (C_out, C_in, 1, 1); bias: (C_out,)
    returns (N, C_out, H, W)
    """
    N, C_in, H, W = x_nchw.shape
    C_out = weight.shape[0]
    HW = H * W
    dtype = x_nchw.dtype
    itemsize = jnp.dtype(dtype).itemsize

    use_vpu = (C_out <= _VPU_MAX_C_OUT) and (C_in <= _VPU_MAX_C_IN)
    sublane_dense = use_vpu and (HW % 128 == 0)

    # ---- Spatial tile sizing: by bytes, not lanes. ---------------------------
    # Activation block >= ~1 MiB per grid step (per-step overhead dominates tiny
    # DMAs); keep 2 * (in + out) block bytes under ~24 MiB so double-buffering
    # fits comfortably inside v7x's 64 MiB VMEM (and trivially v5e/v6e's 128).
    vmem_block_budget = 24 * 1024 * 1024
    max_by_vmem = max(1024, vmem_block_budget // (2 * (C_in + C_out) * itemsize))
    target_elems = max(1024, target_block_bytes // max(1, C_in * itemsize))
    spatial_elems = min(target_elems, max_by_vmem)

    if sublane_dense:
        R = HW // 128
        x_in = x_nchw.reshape(N, C_in, R, 128)          # pure view, no HBM traffic
        ts = min(R, max(8, (spatial_elems // 128 // 8) * 8))
        if ts >= R:
            ts = R                                       # full dim is always legal
        grid = (N, pl.cdiv(R, ts))                       # ragged final block OK
        x_spec = pl.BlockSpec((1, C_in, ts, 128), lambda n, j: (n, 0, j, 0))
        o_spec = pl.BlockSpec((1, C_out, ts, 128), lambda n, j: (n, 0, j, 0))
        out_shape = jax.ShapeDtypeStruct((N, C_out, R, 128), dtype)
        blk_spatial = ts * 128
    else:
        x_in = x_nchw.reshape(N, C_in, HW)               # pure view
        hw128 = pl.cdiv(HW, 128) * 128
        tl = min(hw128, max(128, (spatial_elems // 128) * 128))
        grid = (N, pl.cdiv(HW, tl))                      # ragged final block OK
        x_spec = pl.BlockSpec((1, C_in, tl), lambda n, j: (n, 0, j))
        o_spec = pl.BlockSpec((1, C_out, tl), lambda n, j: (n, 0, j))
        out_shape = jax.ShapeDtypeStruct((N, C_out, HW), dtype)
        blk_spatial = tl

    in_blk_bytes = C_in * blk_spatial * itemsize
    out_blk_bytes = C_out * blk_spatial * itemsize
    vmem_limit = int(min(max(4 * (in_blk_bytes + out_blk_bytes),
                             16 * 1024 * 1024),
                         48 * 1024 * 1024))

    if use_vpu:
        kernel = _outconv_vpu_kernel
        # Tiny parameter tables -> SMEM scalars, broadcast on the VPU.
        param_specs = [
            pl.BlockSpec(memory_space=pltpu.MemorySpace.SMEM),   # weight (C_out, C_in)
            pl.BlockSpec(memory_space=pltpu.MemorySpace.SMEM),   # bias   (C_out,)
        ]
        params = (weight.reshape(C_out, C_in).astype(jnp.float32),
                  bias.astype(jnp.float32))
    else:
        kernel = _outconv_mxu_kernel
        # Resident VMEM blocks (constant index maps) for the MXU contraction.
        param_specs = [
            pl.BlockSpec((C_out, C_in), lambda n, j: (0, 0)),
            pl.BlockSpec((C_out, 1), lambda n, j: (0, 0)),
        ]
        params = (weight.reshape(C_out, C_in), bias.reshape(C_out, 1))

    out = pl.pallas_call(
        kernel,
        out_shape=out_shape,
        grid_spec=pltpu.PrefetchScalarGridSpec(
            num_scalar_prefetch=0,
            grid=grid,
            in_specs=param_specs + [x_spec],
            out_specs=o_spec,
        ),
        compiler_params=pltpu.CompilerParams(
            # Batch and spatial tiles are independent -> shard across TensorCores.
            dimension_semantics=("parallel", "parallel"),
            vmem_limit_bytes=vmem_limit,
        ),
    )(*params, x_in)

    return out.reshape(N, C_out, H, W)


if __name__ == "__main__":
    # Small, deterministic setup: OutConv(in_channels=4, out_channels=3)
    N, C_in, C_out, H, W = 2, 4, 3, 16, 16

    key = jax.random.PRNGKey(0)
    kx, kw, kb = jax.random.split(key, 3)

    x = jax.random.normal(kx, (N, C_in, H, W), dtype=jnp.float32)
    # Conv2d(4, 3, kernel_size=1) parameter shapes
    weight = jax.random.normal(kw, (C_out, C_in, 1, 1), dtype=jnp.float32) * 0.1
    bias = jax.random.normal(kb, (C_out,), dtype=jnp.float32) * 0.1

    out = outconv_apply(x, weight, bias)
    jax.block_until_ready(out)

    # Reference check in plain JAX (same math as nn.Conv2d with k=1)
    ref = jnp.einsum("nchw,oc->nohw", x, weight.reshape(C_out, C_in)) + bias[
        None, :, None, None]
    assert out.shape == (N, C_out, H, W)
    assert jnp.allclose(out, ref, atol=1e-5, rtol=1e-5)

    print("KERNEL_OK")
</pallas_src>

<mosaic_0001>
module attributes {stable_mosaic.version = 11 : i64} {
  func.func @_outconv_vpu_kernel(%arg0: i32, %arg1: i32, %arg2: memref<3x4xf32, #tpu.memory_space<smem>>, %arg3: memref<3xf32, #tpu.memory_space<smem>>, %arg4: memref<1x4x2x128xf32, #tpu.memory_space<vmem>>, %arg5: memref<1x3x2x128xf32, #tpu.memory_space<vmem>>) attributes {dimension_semantics = [#tpu.dimension_semantics<parallel>, #tpu.dimension_semantics<parallel>], iteration_bounds = array<i64: 2, 1>, scalar_prefetch = 0 : i64, scratch_operands = 0 : i64, tpu.core_type = #tpu.core_type<tc>, window_params = [{transform_indices = @transform_0, window_bounds = array<i64: 3, 4>}, {transform_indices = @transform_1, window_bounds = array<i64: 3>}, {transform_indices = @transform_2, window_bounds = array<i64: 1, 4, 2, 128>}, {transform_indices = @transform_3, window_bounds = array<i64: 1, 3, 2, 128>}]} {
    %c0 = arith.constant 0 : index
    %c0_0 = arith.constant 0 : index
    %c0_1 = arith.constant 0 : index
    %c0_2 = arith.constant 0 : index
    %0 = vector.load %arg4[%c0, %c0_0, %c0_1, %c0_2] : memref<1x4x2x128xf32, #tpu.memory_space<vmem>>, vector<1x1x2x128xf32>
    %1 = vector.shape_cast %0 : vector<1x1x2x128xf32> to vector<2x128xf32>
    %c0_3 = arith.constant 0 : index
    %c1 = arith.constant 1 : index
    %c0_4 = arith.constant 0 : index
    %c0_5 = arith.constant 0 : index
    %2 = vector.load %arg4[%c0_3, %c1, %c0_4, %c0_5] : memref<1x4x2x128xf32, #tpu.memory_space<vmem>>, vector<1x1x2x128xf32>
    %3 = vector.shape_cast %2 : vector<1x1x2x128xf32> to vector<2x128xf32>
    %c0_6 = arith.constant 0 : index
    %c2 = arith.constant 2 : index
    %c0_7 = arith.constant 0 : index
    %c0_8 = arith.constant 0 : index
    %4 = vector.load %arg4[%c0_6, %c2, %c0_7, %c0_8] : memref<1x4x2x128xf32, #tpu.memory_space<vmem>>, vector<1x1x2x128xf32>
    %5 = vector.shape_cast %4 : vector<1x1x2x128xf32> to vector<2x128xf32>
    %c0_9 = arith.constant 0 : index
    %c3 = arith.constant 3 : index
    %c0_10 = arith.constant 0 : index
    %c0_11 = arith.constant 0 : index
    %6 = vector.load %arg4[%c0_9, %c3, %c0_10, %c0_11] : memref<1x4x2x128xf32, #tpu.memory_space<vmem>>, vector<1x1x2x128xf32>
    %7 = vector.shape_cast %6 : vector<1x1x2x128xf32> to vector<2x128xf32>
    %c0_12 = arith.constant 0 : index
    %c0_13 = arith.constant 0 : index
    %8 = memref.load %arg2[%c0_12, %c0_13] : memref<3x4xf32, #tpu.memory_space<smem>>
    %9 = vector.broadcast %8 : f32 to vector<2x128xf32>
    %10 = arith.mulf %1, %9 : vector<2x128xf32>
    %c0_14 = arith.constant 0 : index
    %11 = memref.load %arg3[%c0_14] : memref<3xf32, #tpu.memory_space<smem>>
    %12 = vector.broadcast %11 : f32 to vector<2x128xf32>
    %13 = arith.addf %10, %12 : vector<2x128xf32>
    %c0_15 = arith.constant 0 : index
    %c1_16 = arith.constant 1 : index
    %14 = memref.load %arg2[%c0_15, %c1_16] : memref<3x4xf32, #tpu.memory_space<smem>>
    %15 = vector.broadcast %14 : f32 to vector<2x128xf32>
    %16 = arith.mulf %3, %15 : vector<2x128xf32>
    %17 = arith.addf %13, %16 : vector<2x128xf32>
    %c0_17 = arith.constant 0 : index
    %c2_18 = arith.constant 2 : index
    %18 = memref.load %arg2[%c0_17, %c2_18] : memref<3x4xf32, #tpu.memory_space<smem>>
    %19 = vector.broadcast %18 : f32 to vector<2x128xf32>
    %20 = arith.mulf %5, %19 : vector<2x128xf32>
    %21 = arith.addf %17, %20 : vector<2x128xf32>
    %c0_19 = arith.constant 0 : index
    %c3_20 = arith.constant 3 : index
    %22 = memref.load %arg2[%c0_19, %c3_20] : memref<3x4xf32, #tpu.memory_space<smem>>
    %23 = vector.broadcast %22 : f32 to vector<2x128xf32>
    %24 = arith.mulf %7, %23 : vector<2x128xf32>
    %25 = arith.addf %21, %24 : vector<2x128xf32>
    %c0_21 = arith.constant 0 : index
    %c0_22 = arith.constant 0 : index
    %c0_23 = arith.constant 0 : index
    %c0_24 = arith.constant 0 : index
    %26 = vector.load %arg5[%c0_21, %c0_22, %c0_23, %c0_24] : memref<1x3x2x128xf32, #tpu.memory_space<vmem>>, vector<1x1x2x128xf32>
    %27 = vector.shape_cast %26 : vector<1x1x2x128xf32> to vector<2x128xf32>
    %28 = vector.shape_cast %25 : vector<2x128xf32> to vector<1x1x2x128xf32>
    tpu.vector_store %arg5[%c0_21, %c0_22, %c0_23, %c0_24], %28 {strides = array<i32>} : memref<1x3x2x128xf32, #tpu.memory_space<vmem>>, vector<1x1x2x128xf32>,
    %c1_25 = arith.constant 1 : index
    %c0_26 = arith.constant 0 : index
    %29 = memref.load %arg2[%c1_25, %c0_26] : memref<3x4xf32, #tpu.memory_space<smem>>
    %30 = vector.broadcast %29 : f32 to vector<2x128xf32>
    %31 = arith.mulf %1, %30 : vector<2x128xf32>
    %c1_27 = arith.constant 1 : index
    %32 = memref.load %arg3[%c1_27] : memref<3xf32, #tpu.memory_space<smem>>
    %33 = vector.broadcast %32 : f32 to vector<2x128xf32>
    %34 = arith.addf %31, %33 : vector<2x128xf32>
    %c1_28 = arith.constant 1 : index
    %c1_29 = arith.constant 1 : index
    %35 = memref.load %arg2[%c1_28, %c1_29] : memref<3x4xf32, #tpu.memory_space<smem>>
    %36 = vector.broadcast %35 : f32 to vector<2x128xf32>
    %37 = arith.mulf %3, %36 : vector<2x128xf32>
    %38 = arith.addf %34, %37 : vector<2x128xf32>
    %c1_30 = arith.constant 1 : index
    %c2_31 = arith.constant 2 : index
    %39 = memref.load %arg2[%c1_30, %c2_31] : memref<3x4xf32, #tpu.memory_space<smem>>
    %40 = vector.broadcast %39 : f32 to vector<2x128xf32>
    %41 = arith.mulf %5, %40 : vector<2x128xf32>
    %42 = arith.addf %38, %41 : vector<2x128xf32>
    %c1_32 = arith.constant 1 : index
    %c3_33 = arith.constant 3 : index
    %43 = memref.load %arg2[%c1_32, %c3_33] : memref<3x4xf32, #tpu.memory_space<smem>>
    %44 = vector.broadcast %43 : f32 to vector<2x128xf32>
    %45 = arith.mulf %7, %44 : vector<2x128xf32>
    %46 = arith.addf %42, %45 : vector<2x128xf32>
    %c0_34 = arith.constant 0 : index
    %c1_35 = arith.constant 1 : index
    %c0_36 = arith.constant 0 : index
    %c0_37 = arith.constant 0 : index
    %47 = vector.load %arg5[%c0_34, %c1_35, %c0_36, %c0_37] : memref<1x3x2x128xf32, #tpu.memory_space<vmem>>, vector<1x1x2x128xf32>
    %48 = vector.shape_cast %47 : vector<1x1x2x128xf32> to vector<2x128xf32>
    %49 = vector.shape_cast %46 : vector<2x128xf32> to vector<1x1x2x128xf32>
    tpu.vector_store %arg5[%c0_34, %c1_35, %c0_36, %c0_37], %49 {strides = array<i32>} : memref<1x3x2x128xf32, #tpu.memory_space<vmem>>, vector<1x1x2x128xf32>,
    %c2_38 = arith.constant 2 : index
    %c0_39 = arith.constant 0 : index
    %50 = memref.load %arg2[%c2_38, %c0_39] : memref<3x4xf32, #tpu.memory_space<smem>>
    %51 = vector.broadcast %50 : f32 to vector<2x128xf32>
    %52 = arith.mulf %1, %51 : vector<2x128xf32>
    %c2_40 = arith.constant 2 : index
    %53 = memref.load %arg3[%c2_40] : memref<3xf32, #tpu.memory_space<smem>>
    %54 = vector.broadcast %53 : f32 to vector<2x128xf32>
    %55 = arith.addf %52, %54 : vector<2x128xf32>
    %c2_41 = arith.constant 2 : index
    %c1_42 = arith.constant 1 : index
    %56 = memref.load %arg2[%c2_41, %c1_42] : memref<3x4xf32, #tpu.memory_space<smem>>
    %57 = vector.broadcast %56 : f32 to vector<2x128xf32>
    %58 = arith.mulf %3, %57 : vector<2x128xf32>
    %59 = arith.addf %55, %58 : vector<2x128xf32>
    %c2_43 = arith.constant 2 : index
    %c2_44 = arith.constant 2 : index
    %60 = memref.load %arg2[%c2_43, %c2_44] : memref<3x4xf32, #tpu.memory_space<smem>>
    %61 = vector.broadcast %60 : f32 to vector<2x128xf32>
    %62 = arith.mulf %5, %61 : vector<2x128xf32>
    %63 = arith.addf %59, %62 : vector<2x128xf32>
    %c2_45 = arith.constant 2 : index
    %c3_46 = arith.constant 3 : index
    %64 = memref.load %arg2[%c2_45, %c3_46] : memref<3x4xf32, #tpu.memory_space<smem>>
    %65 = vector.broadcast %64 : f32 to vector<2x128xf32>
    %66 = arith.mulf %7, %65 : vector<2x128xf32>
    %67 = arith.addf %63, %66 : vector<2x128xf32>
    %c0_47 = arith.constant 0 : index
    %c2_48 = arith.constant 2 : index
    %c0_49 = arith.constant 0 : index
    %c0_50 = arith.constant 0 : index
    %68 = vector.load %arg5[%c0_47, %c2_48, %c0_49, %c0_50] : memref<1x3x2x128xf32, #tpu.memory_space<vmem>>, vector<1x1x2x128xf32>
    %69 = vector.shape_cast %68 : vector<1x1x2x128xf32> to vector<2x128xf32>
    %70 = vector.shape_cast %67 : vector<2x128xf32> to vector<1x1x2x128xf32>
    tpu.vector_store %arg5[%c0_47, %c2_48, %c0_49, %c0_50], %70 {strides = array<i32>} : memref<1x3x2x128xf32, #tpu.memory_space<vmem>>, vector<1x1x2x128xf32>,
    return
  }
  func.func @transform_0(%arg0: i32, %arg1: i32) -> (i32, i32) {
    %c0_i32 = arith.constant 0 : i32
    %c0_i32_0 = arith.constant 0 : i32
    %c0_i32_1 = arith.constant 0 : i32
    return %c0_i32, %c0_i32_0 : i32, i32
  }
  func.func @transform_1(%arg0: i32, %arg1: i32) -> i32 {
    %c0_i32 = arith.constant 0 : i32
    %c0_i32_0 = arith.constant 0 : i32
    return %c0_i32 : i32
  }
  func.func @transform_2(%arg0: i32, %arg1: i32) -> (i32, i32, i32, i32) {
    %c0_i32 = arith.constant 0 : i32
    %c0_i32_0 = arith.constant 0 : i32
    %c0_i32_1 = arith.constant 0 : i32
    return %arg0, %c0_i32, %arg1, %c0_i32_0 : i32, i32, i32, i32
  }
  func.func @transform_3(%arg0: i32, %arg1: i32) -> (i32, i32, i32, i32) {
    %c0_i32 = arith.constant 0 : i32
    %c0_i32_0 = arith.constant 0 : i32
    %c0_i32_1 = arith.constant 0 : i32
    return %arg0, %c0_i32, %arg1, %c0_i32_0 : i32, i32, i32, i32
  }
}

</mosaic_0001>

<bundles_post_ra>
// kernel: tpu_custom_call.1
= control target key start
LH: loop header
LB: loop body
LE: loop exit
PB: predicated region body
PF: predicated region fallthrough
CT: control target
= control target key end

     0   :  { %s886_s0 = inlined_call_operand.hbm [shape: f32[3,4], index: 0, kind: input, shape index: {}]   ;;  %s887_s1 = inlined_call_operand.hbm [shape: f32[3], index: 1, kind: input, shape index: {}]   ;;  %s888_s2 = inlined_call_operand.hbm [shape: f32[2,4,2,128], index: 2, kind: input, shape index: {}]   ;;  %s889_s3 = inlined_call_operand.hbm [shape: f32[2,3,2,128], index: 3, kind: output, shape index: {}]  }
   0x1   :  { %890 = sst [smem:[#allocation14_spill]] %s886_s0 }
   0x2   :  { %8 = vsyncpa [#allocation5], 0 }
   0x3   :  { %9 = vsyncpa [#allocation7], 0 }
   0x4   :  { %10 = vsyncpa [#allocation3], 0 }
   0x5   :  { %12 = vsyncpa [#allocation3 + $0x1], 0 }
   0x6   :  { %13 = vsyncpa [#allocation4], 0 }
   0x7   :  { %15 = vsyncpa [#allocation4 + $0x1], 0  ;;  %s727_s12 = smov 0   ;;  %s729_s13 = smov 0  }
   0x8   :  { %s731_s14 = smov 0   ;;  %s733_s15 = smov 0  }
   0x9   :  { %s735_s16 = smov 0   ;;  %s737_s17 = smov 0  }
   0xa LB: > { %s425_s18 = sadd.s32 4294967295, %s699_s17   ;;  %s426_s19 = sadd.s32 4294967294, %s699_s17   ;;  %s699_s17 = sphi %s737_s17, %s21_s17   ;;  %s695_s16 = sphi %s735_s16, %s903_s16   ;;  %s691_s15 = sphi %s733_s15, %s902_s15   ;;  %s687_s14 = sphi %s731_s14, %s901_s14   ;;  %s683_s13 = sphi %s729_s13, %s900_s13   ;;  %s679_s12 = sphi %s727_s12, %s899_s12  }
   0xb   : > { %s84_s20 = sadd.s32 1, %s687_s14  ;;  %p91_p0 = scmp.ne.s32.totalorder %s687_s14, %s683_s13 }
   0xc   : > { %p92_p1 = scmp.eq.s32.totalorder %s699_s17, 0  ;;  %p97_p2 = scmp.ne.s32.totalorder %s683_s13, %s679_s12 }
   0xd   : > { %p765_p3 = scmp.eq.s32.totalorder %s425_s18, 0  ;;  %p123_p4 = scmp.eq.s32.totalorder %s425_s18, 1 }
   0xe   : > { %p769_p5 = por %p92_p1, %p91_p0  ;;  %p129_p6 = scmp.eq.s32.totalorder %s426_s19, 1 }
   0xf   : > { %p775_p7 = por %p765_p3, %p97_p2  ;;  %p779_p8 = por %p123_p4, %p91_p0 }
  0x10   : > { %p783_p9 = por %p129_p6, %p97_p2  ;;  %p427_p10 = scmp.ge.s32.totalorder %s699_s17, 1 }
  0x11   : > { %p136_p11 = scmp.lt.s32.totalorder %s699_s17, 3  ;;  %s896_s0 = sld [smem:[#allocation14_spill]] }
  0x12   : > { %p430_p13 = scmp.ge.s32.totalorder %s699_s17, 2  ;;  %p491_p0 = scmp.lt.s32.totalorder %s699_s17, 2 }
  0x13   : > { %p792_p12 = pnand %p427_p10, %p136_p11  ;;  %s158_s5 = sshll.u32 %s887_s1, 4  ;;  %s159_s5 = int_to_ptr.hbm [resolvable:$true] %s158_s5 }
  0x14   : > { %p805_p2 = pnand %p491_p0, %p769_p5  ;;  %s701_s7 = smov [#allocation2]  }
  0x15   : > { %p474_p1 = pneg %p792_p12  ;;  %s702_s8 = smov [#allocation6]  }
  0x16   : > { %s33_s9 = sadd.s32 1, %s695_s16  ;;  %s169_s10 = sand.u32 1, %s687_s14  }
  0x17   : > { %s148_s28 = sshll.u32 %s896_s0, 4  ;;  %p475_p4 = pnand %p474_p1, %p765_p3  ;;  %s149_s28 = int_to_ptr.hbm [resolvable:$true] %s148_s28 }
  0x18   : > { %p35_p6 = scmp.ge.s32.totalorder %s33_s9, 2  ;;  %s431_s11 = sshll.u32 %s169_s10, 3 }
  0x19   : > { %477 = dma.hbm_to_smem (!%p475_p4), %s149_s28, 64, %s701_s7, [#allocation5]  }
  0x1a   : > { %480 = dma.hbm_to_smem (!%p475_p4), %s159_s5, 16, %s702_s8, [#allocation7]  }
  0x1b   : > { %s459_s18 = sshll.u32 %s695_s16, 3  ;;  %s905_s9 = smov (%p35_p6, %s33_s9), 0 }
  0x1c   : > { %s179_s26 = scalar_lea.hbm %s888_s2, %s459_s18  ;;  %s79_s27 = ssub.s32 %s695_s16, %s905_s9 }
  0x1d   : > { %s180_s30 = sshll.u32 %s179_s26, 4  ;;  %p82_p5 = scmp.eq.s32.totalorder %s79_s27, 0  ;;  %s181_s30 = int_to_ptr.hbm [resolvable:$true] %s180_s30 }
  0x1e   : > { %s173_s28 = scalar_lea.vmem [#allocation8], %s431_s11  ;;  %s170_s7 = scalar_lea.sflag [#allocation3], %s169_s10 }
  0x1f   : > { %s182_s4 = sshll.u32 %s173_s28, 4  ;;  %s703_s8 = smov 32   ;;  %s183_s4 = int_to_ptr.vmem [resolvable:$true] %s182_s4 }
  0x20   : > { %s824_s5 = scalar_select %p82_p5, %s687_s14, %s84_s20  }
  0x21   : > { %s704_s0 = smov 2   ;;  %194 = sbr.rel (%p792_p12) target bundleno = 78 (0x4e), region = 32 }
  0x22   : > { %484 = dma.hbm_to_vmem [thread:$0]  (!%p805_p2), %s181_s30, 128, %s183_s4, %s170_s7, %s703_s8, %s703_s8, %s704_s0  }
  0x26   : > { %662 = dma.done.wait (%p765_p3), [#allocation5], 64  }
  0x27   : > { %664 = vsyncadd (%p765_p3), [#allocation5], 4294967232 }
  0x28   : > { %666 = dma.done.wait (%p765_p3), [#allocation7], 16  }
  0x29   : > { %668 = vsyncadd (%p765_p3), [#allocation7], 4294967280  ;;  %s839_s20 = sand.u32 1, %s683_s13  }
  0x2a   : > { %s437_s0 = sshll.u32 %s839_s20, 3  ;;  %s207_s29 = scalar_lea.sflag [#allocation3], %s839_s20 }
  0x2b   : > { %s210_s6 = scalar_lea.vmem [#allocation8], %s437_s0 }
  0x2c   : > { %670 = dma.done.wait (%p775_p7), %s207_s29, 128  }
  0x2d   : > { %672 = vsyncadd (%p775_p7), %s207_s29, 4294967168 }
  0x2e   : > { %216 = sfence }
  0x2f   : > { %s242_s10 = sld [smem:[#allocation2]]  ;;  %v235_v0 = vld [vmem:[%s210_s6] sm:$0x3]  ;;  %v438_v1 = vld [vmem:[%s210_s6 + $0x2] sm:$0x3]  ;;  %s460_s28 = smul.u32 6, %s839_s20 }
  0x30   : > { %s245_s11 = sld [smem:[#allocation6]]  ;;  %v439_v3 = vld [vmem:[%s210_s6 + $0x4] sm:$0x3]  ;;  %v440_v6 = vld [vmem:[%s210_s6 + $0x6] sm:$0x3]  ;;  %s461_s6 = smul.u32 6, %s691_s15 }
  0x31   : > { %s441_s18 = sld [smem:[#allocation2 + $0x1]] }
  0x32   : > { %s442_s21 = sld [smem:[#allocation2 + $0x2]] }
  0x33   : > { %s443_s19 = sld [smem:[#allocation2 + $0x3]] }
  0x34   : > { %s444_s22 = sld [smem:[#allocation2 + $0x80]] }
  0x35   : > { %v243_v2 = vstv %s242_s10  ;;  %s445_s26 = sld [smem:[#allocation6 + $0x1]]  ;;  %s234_s10 = scalar_lea.vmem [#allocation9], %s460_s28 }
  0x36   : > { %v244_v4 = vmul.f32 %v243_v2, %v235_v0  ;;  %v246_v5 = vstv %s245_s11  ;;  %s446_s27 = sld [smem:[#allocation2 + $0x81]]  ;;  %s315_s15 = sshll.u32 %s234_s10, 4  ;;  %s316_s15 = int_to_ptr.vmem [resolvable:$true] %s315_s15 }
  0x37   : > { %v249_v7 = vstv %s441_s18  ;;  %s447_s23 = sld [smem:[#allocation2 + $0x82]]  ;;  %s629_s28 = scalar_lea.hbm %s889_s3, 12 }
  0x38   : > { %v247_v8 = vadd.f32 %v246_v5, %v244_v4  ;;  %v250_v9 = vmul.f32 %v438_v1, %v249_v7  ;;  %v253_v10 = vstv %s442_s21  ;;  %s448_s30 = sld [smem:[#allocation2 + $0x83]]  ;;  %s314_s21 = scalar_lea.hbm %s889_s3, %s461_s6 }
  0x39   : > { %v254_v11 = vmul.f32 %v439_v3, %v253_v10  ;;  %v257_v12 = vstv %s443_s19  ;;  %s450_s4 = sld [smem:[#allocation2 + $0x100]]  ;;  %s317_s19 = sshll.u32 %s314_s21, 4  ;;  %s318_s19 = int_to_ptr.hbm [resolvable:$true] %s317_s19 }
  0x3a   : > { %v251_v13 = vadd.f32 %v250_v9, %v247_v8  ;;  %v258_v14 = vmul.f32 %v440_v6, %v257_v12  ;;  %v262_v15 = vstv %s444_s22  ;;  %s451_s7 = sld [smem:[#allocation6 + $0x2]]  ;;  %s302_s22 = scalar_lea.sflag [#allocation4], %s839_s20 }
  0x3b   : > { %v263_v16 = vmul.f32 %v262_v15, %v235_v0  ;;  %v265_v17 = vstv %s445_s26  ;;  %s452_s8 = sld [smem:[#allocation2 + $0x101]]  ;;  %s623_s26 = sshra.s32 %s318_s19, 4  ;;  %s624_s26 = int_to_ptr.hbm [resolvable:$true] %s623_s26 }
  0x3c   : > { %v255_v18 = vadd.f32 %v254_v11, %v251_v13  ;;  %v268_v19 = vstv %s446_s27  ;;  %s453_s0 = sld [smem:[#allocation2 + $0x102]]  ;;  %s625_s27 = scalar_lea.hbm %s624_s26, 6 }
  0x3d   : > { %v266_v20 = vadd.f32 %v265_v17, %v263_v16  ;;  %v269_v21 = vmul.f32 %v438_v1, %v268_v19  ;;  %v272_v22 = vstv %s447_s23  ;;  %s454_s29 = sld [smem:[#allocation2 + $0x103]]  ;;  %p626_p3 = scmp.ne.s32.totalorder %s624_s26, %s625_s27 }
  0x3e   : > { %v259_v23 = vadd.f32 %v258_v14, %v255_v18  ;;  %v273_v24 = vmul.f32 %v439_v3, %v272_v22  ;;  %v276_v25 = vstv %s448_s30  ;;  %p630_p11 = scmp.lt.s32.totalorder %s624_s26, %s889_s3  ;;  %p631_p12 = scmp.lt.s32.totalorder %s629_s28, %s625_s27 }
  0x3f   : > { %v270_v26 = vadd.f32 %v269_v21, %v266_v20  ;;  %v277_v27 = vmul.f32 %v440_v6, %v276_v25  ;;  %v282_v28 = vstv %s450_s4  ;;  %p627_p7 = pnand %p626_p3, %p779_p8 }
  0x40   : > { %260 = vst [vmem:[%s234_s10] sm:$0x3] %v259_v23  ;;  %v283_v29 = vmul.f32 %v282_v28, %v235_v0  ;;  %v285_v30 = vstv %s451_s7  ;;  %p632_p0 = por %p631_p12, %p630_p11 }
  0x41   : > { %v274_v31 = vadd.f32 %v273_v24, %v270_v26  ;;  %v288_v32 = vstv %s452_s8  ;;  %p628_p10 = pneg %p627_p7 }
  0x42   : > { %v286_v33 = vadd.f32 %v285_v30, %v283_v29  ;;  %v289_v34 = vmul.f32 %v438_v1, %v288_v32  ;;  %v292_v35 = vstv %s453_s0 }
  0x43   : > { %v278_v36 = vadd.f32 %v277_v27, %v274_v31  ;;  %v293_v37 = vmul.f32 %v439_v3, %v292_v35  ;;  %v296_v38 = vstv %s454_s29  ;;  %p633_p1 = pnand %p632_p0, %p628_p10 }
  0x44   : > { %v290_v39 = vadd.f32 %v289_v34, %v286_v33  ;;  %v297_v40 = vmul.f32 %v440_v6, %v296_v38 }
  0x45   : > { %449 = vst [vmem:[%s234_s10 + $0x2] sm:$0x3] %v278_v36 }
  0x46   : > { %v294_v41 = vadd.f32 %v293_v37, %v290_v39 }
  0x48   : > { %v298_v42 = vadd.f32 %v297_v40, %v294_v41 }
  0x4a   : > { %455 = vst [vmem:[%s234_s10 + $0x4] sm:$0x3] %v298_v42 }
  0x4b   : > { %636 = shalt.err (!%p633_p1)
}
  0x4c   : > { %s705_s20 = smov 32   ;;  %s706_s8 = smov 2  }
  0x4d   : > { %472 = dma.vmem_to_hbm [thread:$0]  (%p779_p8), %s316_s15, 96, %s318_s19, %s302_s22, %s705_s20, %s705_s20, %s706_s8  }
  0x4e PF: > { %s332_s0 = sand.u32 1, %s679_s12   ;;  %p486_p2 = pnand %p430_p13, %p783_p9 }
  0x4f   : > { %s333_s29 = scalar_lea.sflag [#allocation4], %s332_s0 }
  0x50   : > { %p487_p4 = pneg %p486_p2 }
  0x52   : > { %674 = dma.done.wait (%p487_p4), %s333_s29, 96  }
  0x53   : > { %676 = vsyncadd (%p487_p4), %s333_s29, 4294967200  ;;  %s21_s17 = sadd.s32 1, %s699_s17   ;;  %s899_s12 = smov %s683_s13 }
  0x54   : > { %p18_p6 = scmp.ge.s32.totalorder %s21_s17, 4   ;;  %s900_s13 = smov %s687_s14 }
  0x55   : > { %s901_s14 = smov %s824_s5  ;;  %s902_s15 = smov %s695_s16 }
  0x56   : > { %s903_s16 = smov %s905_s9  ;;  %20 = sbr.rel (!%p18_p6) target bundleno = 10 (0xa), region = 91 }
  0x5b   :  { %339 = vsyncpa [#allocation3], 1 }
  0x5c   :  { %341 = vsyncpa [#allocation3 + $0x1], 1 }
  0x5d   :  { %342 = vsyncpa [#allocation4], 1 }
  0x5e   :  { %344 = vsyncpa [#allocation4 + $0x1], 1 }
  0x5f   :  { %345 = vsyncpa [#allocation5], 1 }
  0x60   :  { %347 = vsyncpa [#allocation5 + $0x1], 1 }
  0x61   :  { %348 = vsyncpa [#allocation7], 1 }

</bundles_post_ra>
